<compile_context>
chip_gen: v7x
topology: tpu7x:2x2x1
jax: 0.10.0
libtpu: 0.0.40
codegen_flags: <defaults>
</compile_context>

<pallas_src>
import math
from functools import partial

import jax
import jax.numpy as jnp
from jax.experimental import pallas as pl
from jax.experimental.pallas import tpu as pltpu


# -----------------------------------------------------------------------------
# Kernels
# -----------------------------------------------------------------------------
def _pe_add_kernel(x_ref, pe_ref, o_ref):
    # out = x + pe   (pe tile is one row-tile's worth of the pre-broadcast table)
    o_ref[...] = x_ref[...] + pe_ref[...]


def _pe_add_dropout_kernel(seed_ref, x_ref, pe_ref, o_ref, *, p, row_tile, d):
    # Training path: out = dropout(x + pe, p), keep prob = 1 - p, survivors
    # scaled by 1/(1-p).  Counter-based hash PRNG (murmur3 finalizer) over the
    # global element index: portable (no TPU-only prng primitives) and
    # grid-invariant.  Single uint32 compare against a uint32 threshold.
    rows = jax.lax.broadcasted_iota(jnp.int32, (row_tile, d), 0)
    cols = jax.lax.broadcasted_iota(jnp.int32, (row_tile, d), 1)
    gidx = (pl.program_id(0) * row_tile + rows) * d + cols        # global element id
    h = gidx.astype(jnp.uint32) + seed_ref[0].astype(jnp.uint32) * jnp.uint32(0x9E3779B9)
    h = (h ^ (h >> 16)) * jnp.uint32(0x85EBCA6B)
    h = (h ^ (h >> 13)) * jnp.uint32(0xC2B2AE35)
    h = h ^ (h >> 16)
    thresh = jnp.uint32(min(int(round(p * 4294967296.0)), 4294967295))
    keep = h >= thresh                                            # P(keep) = 1 - p
    y = x_ref[...] + pe_ref[...]
    o_ref[...] = jnp.where(keep, y * (1.0 / (1.0 - p)), jnp.zeros_like(y))


# -----------------------------------------------------------------------------
# Wrapper
# -----------------------------------------------------------------------------
def _pick_row_tile(total_rows, b, itemsize, d, target_bytes):
    """Row tile for the flattened (S*B, D) layout.

    Multiple of lcm(B, sublane) so (a) the (8,128)/(16,128) tiling rule holds and
    (b) every tile starts at a row index that is a multiple of B (PE alignment).
    Sized so one (row_tile, D) buffer is ~target_bytes (roofline plateau) while
    2x double-buffered x/out + the resident PE tile stay inside the default
    scoped VMEM on every generation (16 MiB v5e / 32 MiB v6e / 32 MiB v7x).
    """
    sublane = max(8, (8 * 4) // itemsize)              # 8 (f32) / 16 (bf16) / 32 (i8)
    base = (b * sublane) // math.gcd(b, sublane)       # lcm(b, sublane)
    target_rows = max(1, target_bytes // (d * itemsize))
    row_tile = max(base, (target_rows // base) * base)
    if row_tile >= total_rows:
        row_tile = total_rows                          # single full-extent block (legal)
    return row_tile


def positional_encoding_forward(x, pe_table, *, dropout_p=0.1, training=False,
                                seed=0, target_tile_bytes=2 * 1024 * 1024):
    """x: (S, B, D). pe_table: (max_len, D). Returns dropout(x + pe[:B][None]), shape (S, B, D)."""
    s, b, d = x.shape
    if b > pe_table.shape[0]:
        raise ValueError("x.shape[1] exceeds max_len of the positional table")
    if training and not (0.0 <= dropout_p < 1.0):
        raise ValueError("dropout_p must be in [0, 1) for the training path")

    dtype = x.dtype
    itemsize = jnp.dtype(dtype).itemsize
    total_rows = s * b
    x2 = x.reshape(total_rows, d)                      # contiguous -> free reshape
    pe2d = pe_table[:b].astype(dtype)                  # pe row b adds to x[:, b, :]

    row_tile = _pick_row_tile(total_rows, b, itemsize, d, target_tile_bytes)
    grid = (pl.cdiv(total_rows, row_tile),)

    # Pre-broadcast the PE to exactly one row tile; constant index_map -> it is
    # DMA'd once and stays VMEM-resident.  Flat row r is (s=r//B, b=r%B) and
    # every tile starts at a multiple of B, so tiling the (B, D) table lines up.
    pe_blk = jnp.tile(pe2d, (pl.cdiv(row_tile, b), 1))[:row_tile]

    x_spec = pl.BlockSpec((row_tile, d), lambda i, *_: (i, 0))
    pe_spec = pl.BlockSpec((row_tile, d), lambda i, *_: (0, 0))
    o_spec = pl.BlockSpec((row_tile, d), lambda i, *_: (i, 0))
    out_shape = jax.ShapeDtypeStruct((total_rows, d), dtype)
    cparams = pltpu.CompilerParams(dimension_semantics=("parallel",))

    if (not training) or dropout_p == 0.0:
        out2 = pl.pallas_call(
            _pe_add_kernel,
            out_shape=out_shape,
            grid_spec=pltpu.PrefetchScalarGridSpec(
                num_scalar_prefetch=0, grid=grid,
                in_specs=[x_spec, pe_spec], out_specs=o_spec),
            compiler_params=cparams,
            input_output_aliases={0: 0},               # in-place when x is donated
        )(x2, pe_blk)
    else:
        seed_arr = jnp.asarray([seed], dtype=jnp.int32)
        out2 = pl.pallas_call(
            partial(_pe_add_dropout_kernel, p=float(dropout_p),
                    row_tile=row_tile, d=d),
            out_shape=out_shape,
            grid_spec=pltpu.PrefetchScalarGridSpec(
                num_scalar_prefetch=1, grid=grid,
                in_specs=[x_spec, pe_spec], out_specs=o_spec),
            compiler_params=cparams,
            input_output_aliases={1: 0},               # input 0 is the seed scalar
        )(seed_arr, x2, pe_blk)

    return out2.reshape(s, b, d)


# -----------------------------------------------------------------------------
# PE buffer (matches the PyTorch register_buffer, stored as (max_len, d_model))
# -----------------------------------------------------------------------------
def make_pe_table(d_model, max_len=51, dtype=jnp.float32):
    position = jnp.arange(max_len, dtype=jnp.float32)[:, None]
    div_term = jnp.exp(jnp.arange(0, d_model, 2, dtype=jnp.float32)
                       * (-math.log(10000.0) / d_model))
    angles = position * div_term                       # (max_len, d_model // 2)
    pe = jnp.zeros((max_len, d_model), jnp.float32)
    pe = pe.at[:, 0::2].set(jnp.sin(angles))
    pe = pe.at[:, 1::2].set(jnp.cos(angles))
    return pe.astype(dtype)


if __name__ == "__main__":
    SEQ_LEN, BATCH, D_MODEL, MAX_LEN, DROPOUT_P = 8, 2, 128, 51, 0.1

    key = jax.random.PRNGKey(0)
    x = jax.random.normal(key, (SEQ_LEN, BATCH, D_MODEL), jnp.float32)
    pe_table = make_pe_table(D_MODEL, MAX_LEN)

    # Reference (permutes cancel): out[s, b, :] = x[s, b, :] + pe[b, :]
    ref = x + pe_table[:BATCH][None, :, :]

    # Eval / inference path (dropout is identity) — deterministic, bit-checked.
    out = jax.block_until_ready(
        positional_encoding_forward(x, pe_table, dropout_p=DROPOUT_P, training=False))
    assert out.shape == (SEQ_LEN, BATCH, D_MODEL)
    assert jnp.allclose(out, ref, atol=1e-6, rtol=1e-6)

    # Training path: in-kernel counter-hash dropout (mask stream differs from
    # torch's RNG; semantics match: zero w.p. p, survivors scaled by 1/(1-p)).
    out_tr = jax.block_until_ready(
        positional_encoding_forward(x, pe_table, dropout_p=DROPOUT_P,
                                    training=True, seed=0))
    assert out_tr.shape == (SEQ_LEN, BATCH, D_MODEL)
    kept = out_tr != 0.0
    assert jnp.allclose(jnp.where(kept, out_tr * (1.0 - DROPOUT_P), 0.0),
                        jnp.where(kept, ref, 0.0), atol=1e-5, rtol=1e-5)
    drop_frac = float(1.0 - jnp.mean(kept.astype(jnp.float32)))
    assert 0.02 <= drop_frac <= 0.25, drop_frac

    print("KERNEL_OK")
</pallas_src>

<mosaic_0001>
module attributes {stable_mosaic.version = 11 : i64} {
  func.func @_pe_add_kernel(%arg0: i32, %arg1: memref<16x128xf32, #tpu.memory_space<vmem>>, %arg2: memref<16x128xf32, #tpu.memory_space<vmem>>, %arg3: memref<16x128xf32, #tpu.memory_space<vmem>>) attributes {dimension_semantics = [#tpu.dimension_semantics<parallel>], iteration_bounds = array<i64: 1>, scalar_prefetch = 0 : i64, scratch_operands = 0 : i64, tpu.core_type = #tpu.core_type<tc>, window_params = [{transform_indices = @transform_0, window_bounds = array<i64: 16, 128>}, {pipeline_mode = #tpu.pipeline_mode<synchronous>, transform_indices = @transform_1, window_bounds = array<i64: 16, 128>}, {transform_indices = @transform_2, window_bounds = array<i64: 16, 128>}]} {
    %c0 = arith.constant 0 : index
    %c0_0 = arith.constant 0 : index
    %0 = vector.load %arg1[%c0, %c0_0] : memref<16x128xf32, #tpu.memory_space<vmem>>, vector<16x128xf32>
    %c0_1 = arith.constant 0 : index
    %c0_2 = arith.constant 0 : index
    %1 = vector.load %arg2[%c0_1, %c0_2] : memref<16x128xf32, #tpu.memory_space<vmem>>, vector<16x128xf32>
    %2 = arith.addf %0, %1 : vector<16x128xf32>
    %c0_3 = arith.constant 0 : index
    %c0_4 = arith.constant 0 : index
    %3 = vector.load %arg3[%c0_3, %c0_4] : memref<16x128xf32, #tpu.memory_space<vmem>>, vector<16x128xf32>
    tpu.vector_store %arg3[%c0_3, %c0_4], %2 {strides = array<i32>} : memref<16x128xf32, #tpu.memory_space<vmem>>, vector<16x128xf32>,
    return
  }
  func.func @transform_0(%arg0: i32) -> (i32, i32) {
    %c0_i32 = arith.constant 0 : i32
    %c0_i32_0 = arith.constant 0 : i32
    return %arg0, %c0_i32 : i32, i32
  }
  func.func @transform_1(%arg0: i32) -> (i32, i32) {
    %c0_i32 = arith.constant 0 : i32
    %c0_i32_0 = arith.constant 0 : i32
    %c0_i32_1 = arith.constant 0 : i32
    return %c0_i32, %c0_i32_0 : i32, i32
  }
  func.func @transform_2(%arg0: i32) -> (i32, i32) {
    %c0_i32 = arith.constant 0 : i32
    %c0_i32_0 = arith.constant 0 : i32
    return %arg0, %c0_i32 : i32, i32
  }
}

</mosaic_0001>

<bundles_post_ra>
// kernel: tpu_custom_call.1
= control target key start
LH: loop header
LB: loop body
LE: loop exit
PB: predicated region body
PF: predicated region fallthrough
CT: control target
= control target key end

     0   :  { %7 = vsyncpa [#allocation3], 0  ;;  %s158_s0 = inlined_call_operand.hbm [shape: f32[16,128], index: 0, kind: input, shape index: {}, may-alias: {0,2}]   ;;  %s159_s1 = inlined_call_operand.vmem [shape: f32[16,128], index: 1, kind: input, shape index: {}]   ;;  %s160_s2 = inlined_call_operand.hbm [shape: f32[16,128], index: 2, kind: output, shape index: {}, may-alias: {0,2}]  }
   0x1   :  { %8 = vsyncpa [#allocation4], 0  ;;  %s103_s9 = smov [#allocation2]   ;;  %s55_s13 = scalar_lea.hbm %s158_s0, 256 }
   0x2   :  { %s14_s10 = sshll.u32 %s103_s9, 4  ;;  %p56_p0 = scmp.ne.s32.totalorder %s158_s0, %s55_s13  ;;  %s15_s10 = int_to_ptr.vmem [resolvable:$true] %s14_s10 }
   0x3   :  { %p59_p1 = scmp.lt.u32.totalorder %s55_s13, %s158_s0 }
   0x5   :  { %p61_p2 = pnand %p59_p1, %p56_p0 }
   0x7   :  { %64 = shalt.err (!%p61_p2)
}
   0x8   :  { %s65_s18 = scalar_lea.vmem %s15_s10, 256  ;;  %p70_p4 = scmp.lt.s32.totalorder %s15_s10, %s15_s10 }
   0x9   :  { %p66_p3 = scmp.ne.s32.totalorder %s15_s10, %s65_s18  ;;  %p71_p5 = scmp.lt.s32.totalorder %s65_s18, %s65_s18 }
   0xb   :  { %p72_p6 = por %p71_p5, %p70_p4 }
   0xd   :  { %p73_p7 = pnand %p72_p6, %p66_p3 }
   0xf   :  { %76 = shalt.err (!%p73_p7)
}
  0x10   :  { %s104_s19 = smov 128   ;;  %s105_s20 = smov 8  }
  0x11   :  { %20 = dma.hbm_to_vmem [thread:$0]  %s158_s0, 256, %s15_s10, [#allocation3], %s104_s19, %s104_s19, %s105_s20  }
  0x12   :  { %99 = dma.done.wait [#allocation3], 256  }
  0x13   :  { %100 = vsyncadd [#allocation3], 4294967040  ;;  %s106_s23 = smov [#allocation5]   ;;  %v26_v0 = vld [vmem:[#allocation2] sm:$0xff]  ;;  %v27_v2 = vld [vmem:[#allocation2 + $0x8] sm:$0xff] }
  0x14   :  { %s39_s24 = sshll.u32 %s106_s23, 4  ;;  %v28_v1 = vld [vmem:[%s159_s1] sm:$0xff]  ;;  %v29_v4 = vld [vmem:[%s159_s1 + $0x8] sm:$0xff]  ;;  %s40_s24 = int_to_ptr.vmem [resolvable:$true] %s39_s24 }
  0x15   :  { %v30_v3 = vadd.f32 %v28_v1, %v26_v0  ;;  %v31_v5 = vadd.f32 %v29_v4, %v27_v2  ;;  %s77_s0 = scalar_lea.vmem %s40_s24, 256  ;;  %p82_p9 = scmp.lt.s32.totalorder %s40_s24, %s40_s24 }
  0x16   :  { %p78_p8 = scmp.ne.s32.totalorder %s40_s24, %s77_s0  ;;  %p83_p10 = scmp.lt.s32.totalorder %s77_s0, %s77_s0 }
  0x17   :  { %32 = vst [vmem:[#allocation5] sm:$0xff] %v30_v3  ;;  %33 = vst [vmem:[#allocation5 + $0x8] sm:$0xff] %v31_v5 }
  0x18   :  { %p84_p11 = por %p83_p10, %p82_p9 }
  0x1a   :  { %p85_p12 = pnand %p84_p11, %p78_p8 }
  0x1c   :  { %88 = shalt.err (!%p85_p12)
}
  0x1d   :  { %s89_s3 = scalar_lea.hbm %s160_s2, 256 }
  0x1e   :  { %p90_p13 = scmp.ne.s32.totalorder %s160_s2, %s89_s3  ;;  %p93_p0 = scmp.lt.u32.totalorder %s89_s3, %s160_s2 }
  0x20   :  { %p95_p1 = pnand %p93_p0, %p90_p13 }
  0x22   :  { %98 = shalt.err (!%p95_p1)
}
  0x23   :  { %45 = dma.vmem_to_hbm [thread:$0]  %s40_s24, 256, %s160_s2, [#allocation4], %s104_s19, %s104_s19, %s105_s20  }
  0x24   :  { %101 = dma.done.wait [#allocation4], 256  }
  0x25   :  { %102 = vsyncadd [#allocation4], 4294967040 }
  0x26   :  { %49 = vsyncpa [#allocation3], 1 }
  0x27   :  { %50 = vsyncpa [#allocation4], 1 }

</bundles_post_ra>
